<compile_context>
chip_gen: v6e
topology: v6e:2x2x1
jax: 0.10.0
libtpu: 0.0.40
codegen_flags: <defaults>
</compile_context>

<pallas_src>
import math

import jax
import jax.numpy as jnp
from jax.experimental import pallas as pl
from jax.experimental.pallas import tpu as pltpu


# Rows handled as one VMEM-resident block (at D=32: 4096*32*4B = 512 KiB per
# input block — trivially within VMEM on v5e/v6e/v7x even double-buffered).
_SINGLE_BLOCK_MAX_ROWS = 4096
# Row tile for the large-n fallback path (multiple of 8 sublanes).
_TILE_ROWS = 2048


# ----------------------------------------------------------------------------
# Kernels
# ----------------------------------------------------------------------------
def _fused_kernel(u_ref, i_ref, w_ref, b_ref, uo_ref, io_ref):
    # u_ref: (n_u, D), i_ref: (n_i, D), w_ref: (D, D) already transposed
    # (so y = x @ w_ref + b), b_ref: (1, D).
    w = w_ref[...]
    b = b_ref[...]
    uo_ref[...] = (jnp.dot(u_ref[...], w, preferred_element_type=jnp.float32)
                   + b).astype(uo_ref.dtype)
    io_ref[...] = (jnp.dot(i_ref[...], w, preferred_element_type=jnp.float32)
                   + b).astype(io_ref.dtype)


def _linear_kernel(x_ref, w_ref, b_ref, o_ref):
    o_ref[...] = (jnp.dot(x_ref[...], w_ref[...],
                          preferred_element_type=jnp.float32)
                  + b_ref[...]).astype(o_ref.dtype)


# ----------------------------------------------------------------------------
# pallas_call wrappers
# ----------------------------------------------------------------------------
def _fused_linear_small(pre_user, pre_item, w_t, b2):
    """One pallas_call, one grid step: both full arrays resident in VMEM."""
    n_u, d = pre_user.shape
    n_i = pre_item.shape[0]
    return pl.pallas_call(
        _fused_kernel,
        out_shape=(jax.ShapeDtypeStruct((n_u, d), pre_user.dtype),
                   jax.ShapeDtypeStruct((n_i, d), pre_item.dtype)),
        grid_spec=pltpu.PrefetchScalarGridSpec(
            num_scalar_prefetch=0,
            grid=(1,),
            in_specs=[
                pl.BlockSpec((n_u, d), lambda i: (0, 0)),   # user rows (full)
                pl.BlockSpec((n_i, d), lambda i: (0, 0)),   # item rows (full)
                pl.BlockSpec((d, d), lambda i: (0, 0)),     # W.T (shared)
                pl.BlockSpec((1, d), lambda i: (0, 0)),     # bias (shared)
            ],
            out_specs=(pl.BlockSpec((n_u, d), lambda i: (0, 0)),
                       pl.BlockSpec((n_i, d), lambda i: (0, 0))),
        ),
        compiler_params=pltpu.CompilerParams(
            dimension_semantics=("arbitrary",)),
    )(pre_user, pre_item, w_t, b2)


def _tiled_linear(x, w_t, b2):
    """Large-n fallback: big row tiles, ragged last block masked by Pallas."""
    n, d = x.shape
    tm = n if n <= _TILE_ROWS else _TILE_ROWS   # tm == n (full dim) or multiple of 8
    grid = (pl.cdiv(n, tm),)
    return pl.pallas_call(
        _linear_kernel,
        out_shape=jax.ShapeDtypeStruct((n, d), x.dtype),
        grid_spec=pltpu.PrefetchScalarGridSpec(
            num_scalar_prefetch=0,
            grid=grid,
            in_specs=[
                pl.BlockSpec((tm, d), lambda i: (i, 0)),
                pl.BlockSpec((d, d), lambda i: (0, 0)),
                pl.BlockSpec((1, d), lambda i: (0, 0)),
            ],
            out_specs=pl.BlockSpec((tm, d), lambda i: (i, 0)),
        ),
        compiler_params=pltpu.CompilerParams(
            dimension_semantics=("parallel",)),
    )(x, w_t, b2)


@jax.jit
def student_mlp_forward(pre_user, pre_item, params):
    """Mirrors Student_MLP.forward: BOTH embeddings use user_trans (as in the reference)."""
    w_t = params["user_trans_w"].T                 # one-time DxD transpose in the wrapper
    b2 = params["user_trans_b"].reshape(1, -1)

    n_u = pre_user.shape[0]
    n_i = pre_item.shape[0]

    if n_u <= _SINGLE_BLOCK_MAX_ROWS and n_i <= _SINGLE_BLOCK_MAX_ROWS:
        # Single kernel launch, single grid step, no concat/pad/slice glue.
        user_embed, item_embed = _fused_linear_small(pre_user, pre_item, w_t, b2)
    else:
        # Large inputs: per-tensor tiled path (still no concat/pad/slice).
        user_embed = _tiled_linear(pre_user, w_t, b2)
        item_embed = _tiled_linear(pre_item, w_t, b2)
    return user_embed, item_embed


# ----------------------------------------------------------------------------
# Param init (shape-faithful to the module's __init__)
# ----------------------------------------------------------------------------
def init_params(key, embed_size):
    k_uw, k_ub, k_iw, k_ib, k_blw = jax.random.split(key, 5)
    bound_w = math.sqrt(6.0 / (embed_size + embed_size))   # xavier_uniform, square W
    bound_b = 1.0 / math.sqrt(embed_size)                  # PyTorch Linear default bias init
    params = {
        "user_trans_w": jax.random.uniform(
            k_uw, (embed_size, embed_size), jnp.float32, -bound_w, bound_w),
        "user_trans_b": jax.random.uniform(
            k_ub, (embed_size,), jnp.float32, -bound_b, bound_b),
        # item_trans and BLMLP.W exist in __init__ but are unused by forward();
        # kept for shape fidelity only.
        "item_trans_w": jax.random.uniform(
            k_iw, (embed_size, embed_size), jnp.float32, -bound_w, bound_w),
        "item_trans_b": jax.random.uniform(
            k_ib, (embed_size,), jnp.float32, -bound_b, bound_b),
        "blmlp_W": jax.random.uniform(
            k_blw, (embed_size, embed_size), jnp.float32, -bound_w, bound_w),
    }
    return params


if __name__ == "__main__":
    EMBED = 32      # args.embed_size
    N_USER = 16
    N_ITEM = 16

    key = jax.random.PRNGKey(0)
    k_p, k_u, k_i = jax.random.split(key, 3)
    params = init_params(k_p, EMBED)
    pre_user = jax.random.normal(k_u, (N_USER, EMBED), jnp.float32)
    pre_item = jax.random.normal(k_i, (N_ITEM, EMBED), jnp.float32)

    user_embed, item_embed = student_mlp_forward(pre_user, pre_item, params)
    jax.block_until_ready((user_embed, item_embed))

    # sanity check against plain JAX reference (y = x @ W.T + b with user_trans)
    ref_u = pre_user @ params["user_trans_w"].T + params["user_trans_b"]
    ref_i = pre_item @ params["user_trans_w"].T + params["user_trans_b"]
    assert user_embed.shape == (N_USER, EMBED) and item_embed.shape == (N_ITEM, EMBED)
    assert jnp.allclose(user_embed, ref_u, atol=1e-5)
    assert jnp.allclose(item_embed, ref_i, atol=1e-5)

    # also exercise a ragged / non-multiple-of-8 row count (full-block path, no padding)
    u2 = jax.random.normal(k_u, (5, EMBED), jnp.float32)
    i2 = jax.random.normal(k_i, (7, EMBED), jnp.float32)
    ue2, ie2 = student_mlp_forward(u2, i2, params)
    jax.block_until_ready((ue2, ie2))
    assert jnp.allclose(ue2, u2 @ params["user_trans_w"].T + params["user_trans_b"], atol=1e-5)
    assert jnp.allclose(ie2, i2 @ params["user_trans_w"].T + params["user_trans_b"], atol=1e-5)

    # TODO(synk): BLMLP.featureExtract / pairPred / crossPred are not invoked by
    # Student_MLP.forward and are therefore not implemented as kernels here.

    print("KERNEL_OK")
</pallas_src>

<mosaic_0001>
module attributes {stable_mosaic.version = 11 : i64} {
  func.func @_fused_kernel(%arg0: i32, %arg1: memref<16x32xf32, #tpu.memory_space<vmem>>, %arg2: memref<16x32xf32, #tpu.memory_space<vmem>>, %arg3: memref<32x32xf32, #tpu.memory_space<vmem>>, %arg4: memref<1x32xf32, #tpu.memory_space<vmem>>, %arg5: memref<16x32xf32, #tpu.memory_space<vmem>>, %arg6: memref<16x32xf32, #tpu.memory_space<vmem>>) attributes {dimension_semantics = [#tpu.dimension_semantics<arbitrary>], iteration_bounds = array<i64: 1>, scalar_prefetch = 0 : i64, scratch_operands = 0 : i64, tpu.core_type = #tpu.core_type<tc>, window_params = [{pipeline_mode = #tpu.pipeline_mode<synchronous>, transform_indices = @transform_0, window_bounds = array<i64: 16, 32>}, {pipeline_mode = #tpu.pipeline_mode<synchronous>, transform_indices = @transform_1, window_bounds = array<i64: 16, 32>}, {pipeline_mode = #tpu.pipeline_mode<synchronous>, transform_indices = @transform_2, window_bounds = array<i64: 32, 32>}, {pipeline_mode = #tpu.pipeline_mode<synchronous>, transform_indices = @transform_3, window_bounds = array<i64: 1, 32>}, {pipeline_mode = #tpu.pipeline_mode<synchronous>, transform_indices = @transform_4, window_bounds = array<i64: 16, 32>}, {pipeline_mode = #tpu.pipeline_mode<synchronous>, transform_indices = @transform_5, window_bounds = array<i64: 16, 32>}]} {
    %c0 = arith.constant 0 : index
    %c0_0 = arith.constant 0 : index
    %0 = vector.load %arg3[%c0, %c0_0] : memref<32x32xf32, #tpu.memory_space<vmem>>, vector<32x32xf32>
    %c0_1 = arith.constant 0 : index
    %c0_2 = arith.constant 0 : index
    %1 = vector.load %arg4[%c0_1, %c0_2] : memref<1x32xf32, #tpu.memory_space<vmem>>, vector<1x32xf32>
    %c0_3 = arith.constant 0 : index
    %c0_4 = arith.constant 0 : index
    %2 = vector.load %arg1[%c0_3, %c0_4] : memref<16x32xf32, #tpu.memory_space<vmem>>, vector<16x32xf32>
    %cst = arith.constant dense<0.000000e+00> : vector<16x32xf32>
    %3 = tpu.matmul %2, %0, %cst {dimension_numbers = #tpu.dot_dimension_numbers<[1], [0], [0], [1], [0, 0, 1, 1], [], []>} : vector<16x32xf32>, vector<32x32xf32>, vector<16x32xf32> -> vector<16x32xf32>
    %4 = vector.broadcast %1 : vector<1x32xf32> to vector<16x32xf32>
    %5 = arith.addf %3, %4 : vector<16x32xf32>
    %c0_5 = arith.constant 0 : index
    %c0_6 = arith.constant 0 : index
    %6 = vector.load %arg5[%c0_5, %c0_6] : memref<16x32xf32, #tpu.memory_space<vmem>>, vector<16x32xf32>
    tpu.vector_store %arg5[%c0_5, %c0_6], %5 {strides = array<i32>} : memref<16x32xf32, #tpu.memory_space<vmem>>, vector<16x32xf32>,
    %c0_7 = arith.constant 0 : index
    %c0_8 = arith.constant 0 : index
    %7 = vector.load %arg2[%c0_7, %c0_8] : memref<16x32xf32, #tpu.memory_space<vmem>>, vector<16x32xf32>
    %cst_9 = arith.constant dense<0.000000e+00> : vector<16x32xf32>
    %8 = tpu.matmul %7, %0, %cst_9 {dimension_numbers = #tpu.dot_dimension_numbers<[1], [0], [0], [1], [0, 0, 1, 1], [], []>} : vector<16x32xf32>, vector<32x32xf32>, vector<16x32xf32> -> vector<16x32xf32>
    %9 = vector.broadcast %1 : vector<1x32xf32> to vector<16x32xf32>
    %10 = arith.addf %8, %9 : vector<16x32xf32>
    %c0_10 = arith.constant 0 : index
    %c0_11 = arith.constant 0 : index
    %11 = vector.load %arg6[%c0_10, %c0_11] : memref<16x32xf32, #tpu.memory_space<vmem>>, vector<16x32xf32>
    tpu.vector_store %arg6[%c0_10, %c0_11], %10 {strides = array<i32>} : memref<16x32xf32, #tpu.memory_space<vmem>>, vector<16x32xf32>,
    return
  }
  func.func @transform_0(%arg0: i32) -> (i32, i32) {
    %c0_i32 = arith.constant 0 : i32
    %c0_i32_0 = arith.constant 0 : i32
    %c0_i32_1 = arith.constant 0 : i32
    return %c0_i32, %c0_i32_0 : i32, i32
  }
  func.func @transform_1(%arg0: i32) -> (i32, i32) {
    %c0_i32 = arith.constant 0 : i32
    %c0_i32_0 = arith.constant 0 : i32
    %c0_i32_1 = arith.constant 0 : i32
    return %c0_i32, %c0_i32_0 : i32, i32
  }
  func.func @transform_2(%arg0: i32) -> (i32, i32) {
    %c0_i32 = arith.constant 0 : i32
    %c0_i32_0 = arith.constant 0 : i32
    %c0_i32_1 = arith.constant 0 : i32
    return %c0_i32, %c0_i32_0 : i32, i32
  }
  func.func @transform_3(%arg0: i32) -> (i32, i32) {
    %c0_i32 = arith.constant 0 : i32
    %c0_i32_0 = arith.constant 0 : i32
    %c0_i32_1 = arith.constant 0 : i32
    return %c0_i32, %c0_i32_0 : i32, i32
  }
  func.func @transform_4(%arg0: i32) -> (i32, i32) {
    %c0_i32 = arith.constant 0 : i32
    %c0_i32_0 = arith.constant 0 : i32
    %c0_i32_1 = arith.constant 0 : i32
    return %c0_i32, %c0_i32_0 : i32, i32
  }
  func.func @transform_5(%arg0: i32) -> (i32, i32) {
    %c0_i32 = arith.constant 0 : i32
    %c0_i32_0 = arith.constant 0 : i32
    %c0_i32_1 = arith.constant 0 : i32
    return %c0_i32, %c0_i32_0 : i32, i32
  }
}

</mosaic_0001>

<bundles_post_ra>
// kernel: student_mlp_forward.1
= control target key start
LH: loop header
LB: loop body
LE: loop exit
PB: predicated region body
PF: predicated region fallthrough
CT: control target
= control target key end

     0   :  { %11 = vsyncpa [#allocation3], 0  ;;  %s397_s0 = inlined_call_operand.vmem [shape: f32[16,32], index: 0, kind: input, shape index: {}]   ;;  %s398_s1 = inlined_call_operand.vmem [shape: f32[16,32], index: 1, kind: input, shape index: {}]   ;;  %s399_s2 = inlined_call_operand.vmem [shape: f32[32,32], index: 2, kind: input, shape index: {}]   ;;  %s400_s3 = inlined_call_operand.vmem [shape: f32[1,32], index: 3, kind: input, shape index: {}]   ;;  %s401_s4 = inlined_call_operand.hbm [shape: f32[16,32], index: 4, kind: output, shape index: {0}]   ;;  %s402_s5 = inlined_call_operand.hbm [shape: f32[16,32], index: 5, kind: output, shape index: {1}]  }
   0x1   :  { %v24_v0 = vld [vmem:[%s399_s2 + $0x18] sm:$0xff]  ;;  %v23_v1 = vld [vmem:[%s399_s2 + $0x10] sm:$0xff]  ;;  %v22_v2 = vld [vmem:[%s399_s2 + $0x8] sm:$0xff] }
   0x2   :  { %252 = vmatprep.subr.mxu0 %v24_v0  ;;  %263 = vmatprep.subr.mxu1 %v24_v0 }
   0x3   :  { %253 = vmatpush3.msra.mxu0 %v24_v0  ;;  %264 = vmatpush3.msra.mxu1 %v24_v0 }
   0x4   :  { %12 = vsyncpa [#allocation5], 0  ;;  %254 = vmatprep.subr.mxu0 %v23_v1  ;;  %265 = vmatprep.subr.mxu1 %v23_v1  ;;  %v21_v3 = vld [vmem:[%s399_s2] sm:$0xff]  ;;  %vm34_vm0 = vcmask 261120   ;;  %v27_v6 = vld [vmem:[%s397_s0 + $0x8] sm:$0xff]  ;;  %s322_s10 = smov [#allocation2]  }
   0x5   :  { %255 = vmatpush3.msra.mxu0 %v23_v1  ;;  %266 = vmatpush3.msra.mxu1 %v23_v1  ;;  %v26_v4 = vld [vmem:[%s397_s0] sm:$0xff]  ;;  %v119_v7 = vld [vmem:[%s398_s1 + $0x8] sm:$0xff]  ;;  %s208_s0 = sshll.u32 %s322_s10, 4  ;;  %s209_s0 = int_to_ptr.vmem [resolvable:$true] %s208_s0 }
   0x6   :  { %256 = vmatprep.subr.mxu0 %v22_v2  ;;  %267 = vmatprep.subr.mxu1 %v22_v2  ;;  %v118_v5 = vld [vmem:[%s398_s1] sm:$0xff]  ;;  %s323_s1 = smov [#allocation4]   ;;  %p283_p1 = scmp.lt.s32.totalorder %s209_s0, %s209_s0 }
   0x7   :  { %257 = vmatpush3.msra.mxu0 %v22_v2  ;;  %268 = vmatpush3.msra.mxu1 %v22_v2  ;;  %v235_v8 = vld [vmem:[%s400_s3] ss:$0 sm:$0xff]  ;;  %s220_s11 = sshll.u32 %s323_s1, 4  ;;  %s278_s3 = scalar_lea.vmem %s209_s0, 256  ;;  %s221_s11 = int_to_ptr.vmem [resolvable:$true] %s220_s11 }
   0x8   :  { %258 = vmatprep.subr.mxu0 %v21_v3  ;;  %269 = vmatprep.subr.mxu1 %v21_v3  ;;  %p279_p0 = scmp.ne.s32.totalorder %s209_s0, %s278_s3  ;;  %p284_p2 = scmp.lt.s32.totalorder %s278_s3, %s278_s3 }
   0x9   :  { %259 = vmatpush3.msra.mxu0 %v21_v3  ;;  %260 = vmatprep.mubr.msk.f32.mxu0 %vm34_vm0, %v26_v4 }
   0xa   :  { %270 = vmatpush3.msra.mxu1 %v21_v3  ;;  %271 = vmatprep.mubr.msk.f32.mxu1 %vm34_vm0, %v118_v5  ;;  %p285_p3 = por %p284_p2, %p283_p1 }
   0xb   :  { %261 = vmatmul.mubr.msk.f32.vlgmr.msra.gmra.mxu0 %vm34_vm0, %v27_v6  ;;  %272 = vmatmul.mubr.msk.f32.vlgmr.msra.gmra.mxu1 %vm34_vm0, %v119_v7 }
   0xc   :  { %p286_p4 = pnand %p285_p3, %p279_p0 }
  0xcb   :  { %v262_v9 = vpop.f32.mrf.mxu0  ;;  %v273_v10 = vpop.f32.mrf.mxu1 }
  0xcc   :  { %v113_v11 = vadd.f32 %v262_v9, %v235_v8  ;;  %v198_v12 = vadd.f32 %v273_v10, %v235_v8 }
  0xcd   :  { %v107_v13 = vpop.f32.mrf.mxu0  ;;  %v192_v14 = vpop.f32.mrf.mxu1 }
  0xce   :  { %117 = vst.msk [vmem:[#allocation2 + $0x8] sm:$0xff] %vm34_vm0, %v113_v11  ;;  %202 = vst.msk [vmem:[#allocation4 + $0x8] sm:$0xff] %vm34_vm0, %v198_v12  ;;  %v108_v15 = vadd.f32 %v235_v8, %v107_v13  ;;  %v193_v16 = vadd.f32 %v235_v8, %v192_v14 }
  0xd0   :  { %116 = vst.msk [vmem:[#allocation2] sm:$0xff] %vm34_vm0, %v108_v15  ;;  %201 = vst.msk [vmem:[#allocation4] sm:$0xff] %vm34_vm0, %v193_v16 }
  0xd1   :  { %289 = shalt.err (!%p286_p4)
}
  0xd2   :  { %s324_s12 = smov 128   ;;  %s325_s13 = smov 8  }
  0xd3   :  { %214 = dma.vmem_to_hbm [thread:$0]  %s209_s0, 256, %s401_s4, [#allocation3], %s324_s12, %s324_s12, %s325_s13  }
  0xd4   :  { %s298_s16 = scalar_lea.vmem %s221_s11, 256  ;;  %p303_p6 = scmp.lt.s32.totalorder %s221_s11, %s221_s11 }
  0xd5   :  { %p299_p5 = scmp.ne.s32.totalorder %s221_s11, %s298_s16  ;;  %p304_p7 = scmp.lt.s32.totalorder %s298_s16, %s298_s16 }
  0xd7   :  { %p305_p8 = por %p304_p7, %p303_p6 }
  0xd9   :  { %p306_p9 = pnand %p305_p8, %p299_p5 }
  0xdb   :  { %309 = shalt.err (!%p306_p9)
}
  0xdc   :  { %226 = dma.vmem_to_hbm [thread:$0]  %s221_s11, 256, %s402_s5, [#allocation5], %s324_s12, %s324_s12, %s325_s13  }
  0xdd   :  { %318 = dma.done.wait [#allocation3], 256  }
  0xde   :  { %319 = vsyncadd [#allocation3], 4294967040 }
  0xdf   :  { %320 = dma.done.wait [#allocation5], 256  }
  0xe0   :  { %321 = vsyncadd [#allocation5], 4294967040 }
  0xe1   :  { %233 = vsyncpa [#allocation3], 1 }
  0xe2   :  { %234 = vsyncpa [#allocation5], 1 }

</bundles_post_ra>
